<compile_context>
chip_gen: v7x
topology: tpu7x:2x2x1
jax: 0.10.0
libtpu: 0.0.40
codegen_flags: <defaults>
</compile_context>

<pallas_src>
import jax
import jax.numpy as jnp
from jax.experimental import pallas as pl
from jax.experimental.pallas import tpu as pltpu


def _copy_kernel(x_ref, o_ref):
    # Pure lane/sublane-dense tile copy: the chomp lives entirely in the output shape
    # + BlockSpec index_map, so there is no in-kernel slice (no VMEM relayout copy).
    o_ref[...] = x_ref[...]


def _round_up(x: int, m: int) -> int:
    return ((x + m - 1) // m) * m


def _sublane_pack(dtype) -> int:
    # Sublane packing factor: f32 -> 8, bf16/f16 -> 16, int8/fp8 -> 32.
    return max(8, 32 // jnp.dtype(dtype).itemsize)


_LANE_BYTES_CAP = 8192            # lane-tile cap in bytes (2048 f32 / 4096 bf16 / 8192 i8)
_TILE_BYTES_CAP = 2 * 1024 * 1024  # per-tile cap; 2 bufs x (in+out) = 8 MiB (< v5e 16 MiB)
_MIN_SPLIT_BYTES = 256 * 1024      # only force a >=2-step grid when the copy is non-trivial


def chomp1d(x: jax.Array, chomp_size: int) -> jax.Array:
    """Equivalent of torch Chomp1d.forward: x[:, :, :-chomp_size] for chomp_size > 0.

    (Semantic note: PyTorch's `:-0` returns an empty tensor; we require chomp_size > 0.)
    """
    assert chomp_size > 0, "chomp_size must be positive"
    B, C, L = x.shape
    L_out = L - chomp_size
    assert L_out > 0, "chomp_size must be smaller than the length dimension"

    itemsize = jnp.dtype(x.dtype).itemsize
    pack = _sublane_pack(x.dtype)

    # Fold (B, C) into one row axis — free reshape on contiguous NCL, keeps every
    # vreg's sublane axis full even when C is small.
    R = B * C
    x2 = x.reshape(R, L)

    # Lane (last-dim) tile: multiple of 128; cap scales inversely with dtype width.
    TL = min(_LANE_BYTES_CAP // itemsize, _round_up(L_out, 128))
    # Row tile: full R when it fits the byte budget (always layout-legal), otherwise
    # the largest pack-multiple chunk that keeps one tile under ~2 MiB.
    tr_cap = max(pack, (_TILE_BYTES_CAP // (TL * itemsize)) // pack * pack)
    TR = R if R <= tr_cap else tr_cap

    grid_r = pl.cdiv(R, TR)
    grid_l = pl.cdiv(L_out, TL)

    # v7x has 2 TensorCores per chip sharing HBM: if the grid collapsed to one step on
    # a non-trivial copy, split one parallel axis so both cores get work.
    out_bytes = R * L_out * itemsize
    if grid_r * grid_l == 1 and out_bytes >= _MIN_SPLIT_BYTES:
        if R >= 2 * pack:
            TR = _round_up(pl.cdiv(R, 2), pack)
        elif L_out >= 2 * 128:
            TL = _round_up(pl.cdiv(L_out, 2), 128)
        grid_r = pl.cdiv(R, TR)
        grid_l = pl.cdiv(L_out, TL)

    out2 = pl.pallas_call(
        _copy_kernel,
        out_shape=jax.ShapeDtypeStruct((R, L_out), x.dtype),
        grid_spec=pl.GridSpec(
            grid=(grid_r, grid_l),
            # Input and output use the SAME tile / index_map; input blocks stay inside
            # the [0, L_out) window, so the chomped tail is never DMA'd except where
            # the one ragged lane tile straddles the boundary (OOB writes are dropped).
            in_specs=[pl.BlockSpec((TR, TL), lambda r, l: (r, l))],
            out_specs=pl.BlockSpec((TR, TL), lambda r, l: (r, l)),
        ),
        compiler_params=pltpu.CompilerParams(
            dimension_semantics=("parallel", "parallel"),
        ),
        # Pure-bandwidth op: one HBM read + one HBM write of the kept region.
        cost_estimate=pl.CostEstimate(
            flops=0, transcendentals=0, bytes_accessed=2 * out_bytes),
    )(x2)

    # Free reshape back to NCL.
    return out2.reshape(B, C, L_out)


if __name__ == "__main__":
    key = jax.random.PRNGKey(0)

    # Small TCN-like shapes: (batch, channels, length), chomp = (kernel_size-1)*dilation.
    B, C, L, chomp = 2, 4, 16, 3
    x = jax.random.normal(key, (B, C, L), dtype=jnp.float32)
    out = jax.block_until_ready(chomp1d(x, chomp))
    assert out.shape == (B, C, L - chomp)
    assert out.dtype == x.dtype
    assert jnp.array_equal(out, x[:, :, :-chomp])

    # Multi-128 lane axis + ragged last tile (f32).
    x2 = jax.random.normal(jax.random.PRNGKey(1), (2, 8, 1300), dtype=jnp.float32)
    out2 = jax.block_until_ready(chomp1d(x2, 21))
    assert jnp.array_equal(out2, x2[:, :, :-21])

    # bf16 case: exercises dtype-aware sublane packing / lane-tile cap.
    x3 = jax.random.normal(jax.random.PRNGKey(2), (2, 4, 300), dtype=jnp.bfloat16)
    out3 = jax.block_until_ready(chomp1d(x3, 5))
    assert jnp.array_equal(out3, x3[:, :, :-5])

    print("KERNEL_OK")
</pallas_src>

<mosaic_0001>
module attributes {stable_mosaic.version = 11 : i64} {
  func.func @_copy_kernel(%arg0: i32, %arg1: i32, %arg2: memref<8x128xf32, #tpu.memory_space<vmem>>, %arg3: memref<8x128xf32, #tpu.memory_space<vmem>>) attributes {dimension_semantics = [#tpu.dimension_semantics<parallel>, #tpu.dimension_semantics<parallel>], iteration_bounds = array<i64: 1, 1>, scalar_prefetch = 0 : i64, scratch_operands = 0 : i64, tpu.core_type = #tpu.core_type<tc>, window_params = [{transform_indices = @transform_0, window_bounds = array<i64: 8, 128>}, {transform_indices = @transform_1, window_bounds = array<i64: 8, 128>}]} {
    %c0 = arith.constant 0 : index
    %c0_0 = arith.constant 0 : index
    %0 = vector.load %arg2[%c0, %c0_0] : memref<8x128xf32, #tpu.memory_space<vmem>>, vector<8x128xf32>
    %c0_1 = arith.constant 0 : index
    %c0_2 = arith.constant 0 : index
    %1 = vector.load %arg3[%c0_1, %c0_2] : memref<8x128xf32, #tpu.memory_space<vmem>>, vector<8x128xf32>
    tpu.vector_store %arg3[%c0_1, %c0_2], %0 {strides = array<i32>} : memref<8x128xf32, #tpu.memory_space<vmem>>, vector<8x128xf32>,
    return
  }
  func.func @transform_0(%arg0: i32, %arg1: i32) -> (i32, i32) {
    %c0_i32 = arith.constant 0 : i32
    return %arg0, %arg1 : i32, i32
  }
  func.func @transform_1(%arg0: i32, %arg1: i32) -> (i32, i32) {
    %c0_i32 = arith.constant 0 : i32
    return %arg0, %arg1 : i32, i32
  }
}

</mosaic_0001>

<bundles_post_ra>
// kernel: tpu_custom_call.1
= control target key start
LH: loop header
LB: loop body
LE: loop exit
PB: predicated region body
PF: predicated region fallthrough
CT: control target
= control target key end

     0   :  { %6 = vsyncpa [#allocation3], 0  ;;  %s124_s0 = inlined_call_operand.hbm [shape: f32[8,16], index: 0, kind: input, shape index: {}]   ;;  %s125_s1 = inlined_call_operand.hbm [shape: f32[8,13], index: 1, kind: output, shape index: {}]  }
   0x1   :  { %7 = vsyncpa [#allocation4], 0  ;;  %s88_s6 = smov [#allocation2]   ;;  %s40_s10 = scalar_lea.hbm %s124_s0, 128 }
   0x2   :  { %s14_s7 = sshll.u32 %s88_s6, 4  ;;  %p41_p0 = scmp.ne.s32.totalorder %s124_s0, %s40_s10  ;;  %s15_s7 = int_to_ptr.vmem [resolvable:$true] %s14_s7 }
   0x3   :  { %p44_p1 = scmp.lt.u32.totalorder %s40_s10, %s124_s0 }
   0x5   :  { %p46_p2 = pnand %p44_p1, %p41_p0 }
   0x7   :  { %49 = shalt.err (!%p46_p2)
}
   0x8   :  { %s50_s15 = scalar_lea.vmem %s15_s7, 128  ;;  %p55_p4 = scmp.lt.s32.totalorder %s15_s7, %s15_s7 }
   0x9   :  { %p51_p3 = scmp.ne.s32.totalorder %s15_s7, %s50_s15  ;;  %p56_p5 = scmp.lt.s32.totalorder %s50_s15, %s50_s15 }
   0xb   :  { %p57_p6 = por %p56_p5, %p55_p4 }
   0xd   :  { %p58_p7 = pnand %p57_p6, %p51_p3 }
   0xf   :  { %61 = shalt.err (!%p58_p7)
}
  0x10   :  { %17 = dma.hbm_to_vmem [thread:$0]  %s124_s0, 128, %s15_s7, [#allocation3]  }
  0x11   :  { %84 = dma.done.wait [#allocation3], 128  }
  0x12   :  { %85 = vsyncadd [#allocation3], 4294967168  ;;  %s89_s18 = smov [#allocation5]   ;;  %v21_v0 = vld [vmem:[#allocation2] sm:$0xff] }
  0x13   :  { %s29_s19 = sshll.u32 %s89_s18, 4  ;;  %22 = vst [vmem:[#allocation5] sm:$0xff] %v21_v0  ;;  %s30_s19 = int_to_ptr.vmem [resolvable:$true] %s29_s19 }
  0x14   :  { %s62_s20 = scalar_lea.vmem %s30_s19, 128  ;;  %p67_p9 = scmp.lt.s32.totalorder %s30_s19, %s30_s19 }
  0x15   :  { %p63_p8 = scmp.ne.s32.totalorder %s30_s19, %s62_s20  ;;  %p68_p10 = scmp.lt.s32.totalorder %s62_s20, %s62_s20 }
  0x17   :  { %p69_p11 = por %p68_p10, %p67_p9 }
  0x19   :  { %p70_p12 = pnand %p69_p11, %p63_p8 }
  0x1b   :  { %73 = shalt.err (!%p70_p12)
}
  0x1c   :  { %s74_s23 = scalar_lea.hbm %s125_s1, 128 }
  0x1d   :  { %p75_p13 = scmp.ne.s32.totalorder %s125_s1, %s74_s23  ;;  %p78_p0 = scmp.lt.u32.totalorder %s74_s23, %s125_s1 }
  0x1f   :  { %p80_p1 = pnand %p78_p0, %p75_p13 }
  0x21   :  { %83 = shalt.err (!%p80_p1)
}
  0x22   :  { %32 = dma.vmem_to_hbm [thread:$0]  %s30_s19, 128, %s125_s1, [#allocation4]  }
  0x23   :  { %86 = dma.done.wait [#allocation4], 128  }
  0x24   :  { %87 = vsyncadd [#allocation4], 4294967168 }
  0x25   :  { %36 = vsyncpa [#allocation3], 1 }
  0x26   :  { %37 = vsyncpa [#allocation4], 1 }

</bundles_post_ra>
